<compile_context>
chip_gen: v7x
topology: tpu7x:2x2x1
jax: 0.10.0
libtpu: 0.0.40
codegen_flags: <defaults>
</compile_context>

<pallas_src>
import functools
import numpy as np
import jax
import jax.numpy as jnp
from jax.experimental import pallas as pl
from jax.experimental.pallas import tpu as pltpu

# ----- quantization tables (from the PyTorch module) -----
hwgq_steps = {1: 0.799, 2: 0.538, 3: 0.3217, 4: 0.185, 5: 0.104, 6: 0.058,
              7: 0.033, 8: 0.019}
gaussian_steps = {1: 1.596, 2: 0.996, 3: 0.586, 4: 0.336, 5: 0.19, 6: 0.106,
                  7: 0.059, 8: 0.032}

# ----- module defaults (QuantActivLinear(inplane, outplane, wbit=1, abit=2)) -----
WBIT = 1
ABIT = 2


def _round_up(x, m):
    return (x + m - 1) // m * m


# --------------------------------------------------------------------------
# (1) One-shot gaussian weight quantization -> integer levels in bf16.
#     Runs once per call (not in the GEMM loop); the scale (wstep) is applied
#     on the GEMM output instead, so the matmul operands are tiny exact ints.
# --------------------------------------------------------------------------
def _weight_quant_kernel(wstep_ref, w_ref, o_ref, *, wbit):
    lvls = float(2 ** wbit) / 2.0
    wstep = wstep_ref[0]
    q = jnp.clip(jnp.round(w_ref[...] / wstep), -lvls, lvls - 1.0)
    o_ref[...] = q.astype(o_ref.dtype)


# --------------------------------------------------------------------------
# (2) Tiled GEMM with fused HWGQ activation quantization.
#     kernel args (PrefetchScalarGridSpec): scale (SMEM), x tile, quantized
#     weight tile (bf16 integer levels), bias tile, output tile.
# --------------------------------------------------------------------------
def _qlinear_kernel(scale_ref, x_ref, wq_ref, b_ref, o_ref, *, abit, a_step):
    # HWGQ activation quantization -> integer levels {0 .. 2^abit-1}
    clip_thr = a_step * float(2 ** abit - 1)
    x = jnp.clip(x_ref[...], 0.0, clip_thr)
    xi = jnp.round(x / a_step)                       # exact small integers (f32)

    # MXU matmul on low-precision (bf16) integer-valued operands, f32 accumulate
    acc = jnp.dot(xi.astype(jnp.bfloat16), wq_ref[...],
                  preferred_element_type=jnp.float32)

    # Apply the combined quant scale (a_step * wstep) once, then bias.
    o_ref[...] = acc * scale_ref[0] + b_ref[...]


def quant_activ_linear(x, weight, bias, *, wbit=WBIT, abit=ABIT,
                       tm_target=512, tn_target=512):
    """x: [..., inplane] f32; weight: [outplane, inplane]; bias: [outplane]."""
    a_step = hwgq_steps[abit]
    g_step = gaussian_steps[wbit]

    orig_shape = x.shape
    k = orig_shape[-1]
    n_out = weight.shape[0]
    x2d = x.reshape(-1, k).astype(jnp.float32)
    m = x2d.shape[0]

    # ---- padding / tile sizing: lane-dense output, aligned contraction ----
    k_pad = _round_up(k, 16)            # bf16 sublane multiple for the weight
    n_pad = _round_up(n_out, 128)       # lane-dense output columns
    m_pad = _round_up(m, 8)
    tm = min(tm_target, m_pad)          # row tile (fits VMEM incl. v7x 64 MiB)
    m_pad = _round_up(m_pad, tm)
    tn = min(tn_target, n_pad)          # column tile
    n_pad = _round_up(n_pad, tn)
    # TODO(synk): very large K (contraction) is not tiled here; add a K grid
    # axis with a VMEM accumulator if K*tm*4 bytes stops fitting VMEM.

    x_p = jnp.zeros((m_pad, k_pad), jnp.float32).at[:m, :k].set(x2d)
    # weight [N, K] -> [K, N] so the GEMM output is lane-dense over outplane
    w_kn = jnp.zeros((k_pad, n_pad), jnp.float32).at[:k, :n_out].set(
        weight.astype(jnp.float32).T)
    b_p = jnp.zeros((1, n_pad), jnp.float32).at[0, :n_out].set(
        bias.astype(jnp.float32))

    # gaussian step scalar (torch .std() is unbiased, ddof=1)
    wstep = (g_step * jnp.std(weight.astype(jnp.float32), ddof=1)
             ).reshape(1).astype(jnp.float32)

    # ---- (1) one-shot weight quantization kernel ----
    wq = pl.pallas_call(
        functools.partial(_weight_quant_kernel, wbit=wbit),
        out_shape=jax.ShapeDtypeStruct((k_pad, n_pad), jnp.bfloat16),
        in_specs=[
            pl.BlockSpec(memory_space=pltpu.MemorySpace.SMEM),   # wstep scalar
            pl.BlockSpec(memory_space=pltpu.MemorySpace.VMEM),   # weight [K,N]
        ],
        out_specs=pl.BlockSpec(memory_space=pltpu.MemorySpace.VMEM),
    )(wstep, w_kn)

    # ---- (2) tiled, pipelined GEMM with fused HWGQ activation quant ----
    scale = (jnp.float32(a_step) * wstep).astype(jnp.float32)    # (1,) scalar
    grid = (m_pad // tm, n_pad // tn)
    grid_spec = pltpu.PrefetchScalarGridSpec(
        num_scalar_prefetch=1,
        grid=grid,
        in_specs=[
            pl.BlockSpec((tm, k_pad), lambda i, j, s: (i, 0)),   # x row tile
            pl.BlockSpec((k_pad, tn), lambda i, j, s: (0, j)),   # weight tile
            pl.BlockSpec((1, tn), lambda i, j, s: (0, j)),       # bias tile
        ],
        out_specs=pl.BlockSpec((tm, tn), lambda i, j, s: (i, j)),
    )
    out_p = pl.pallas_call(
        functools.partial(_qlinear_kernel, abit=abit, a_step=a_step),
        out_shape=jax.ShapeDtypeStruct((m_pad, n_pad), jnp.float32),
        grid_spec=grid_spec,
        compiler_params=pltpu.CompilerParams(
            dimension_semantics=("parallel", "parallel"),
            vmem_limit_bytes=32 * 1024 * 1024),
    )(scale, x_p, wq, b_p)

    out = out_p[:m, :n_out]
    return out.reshape(orig_shape[:-1] + (n_out,))


def _reference(x, weight, bias, *, wbit=WBIT, abit=ABIT):
    """Plain-JAX reference matching the PyTorch forward semantics."""
    a_step = hwgq_steps[abit]
    clip_thr = a_step * float(2 ** abit - 1)
    y = jnp.clip(x, 0.0, clip_thr)
    y = jnp.round(y / a_step) * a_step
    step = gaussian_steps[wbit] * jnp.std(weight, ddof=1)
    lvls = float(2 ** wbit) / 2.0
    qw = jnp.clip(jnp.round(weight / step), -lvls, lvls - 1.0) * step
    out = jnp.einsum('...k,nk->...n', y, qw,
                     precision=jax.lax.Precision.HIGHEST)
    return out + bias


if __name__ == "__main__":
    # Small shapes consistent with the module: batch=2, seq=8,
    # inplane=32, outplane=32.
    key = jax.random.PRNGKey(0)
    kx, kw, kb = jax.random.split(key, 3)
    B, S, INPLANE, OUTPLANE = 2, 8, 32, 32

    x = jax.random.normal(kx, (B, S, INPLANE), dtype=jnp.float32)
    weight = 0.1 * jax.random.normal(kw, (OUTPLANE, INPLANE), dtype=jnp.float32)
    bias = 0.01 * jax.random.normal(kb, (OUTPLANE,), dtype=jnp.float32)

    out = quant_activ_linear(x, weight, bias)
    out = jax.block_until_ready(out)

    ref = jax.block_until_ready(_reference(x, weight, bias))
    np.testing.assert_allclose(np.asarray(out), np.asarray(ref),
                               rtol=1e-5, atol=1e-5)
    print("KERNEL_OK")
</pallas_src>

<mosaic_0001>
module attributes {stable_mosaic.version = 11 : i64} {
  func.func @_weight_quant_kernel(%arg0: memref<1xf32, #tpu.memory_space<smem>>, %arg1: memref<32x128xf32, #tpu.memory_space<vmem>>, %arg2: memref<32x128xbf16, #tpu.memory_space<vmem>>) attributes {dimension_semantics = [], scalar_prefetch = 0 : i64, scratch_operands = 0 : i64, tpu.core_type = #tpu.core_type<tc>} {
    %c0 = arith.constant 0 : index
    %0 = memref.load %arg0[%c0] : memref<1xf32, #tpu.memory_space<smem>>
    %c0_0 = arith.constant 0 : index
    %c0_1 = arith.constant 0 : index
    %1 = vector.load %arg1[%c0_0, %c0_1] : memref<32x128xf32, #tpu.memory_space<vmem>>, vector<32x128xf32>
    %2 = vector.broadcast %0 : f32 to vector<32x128xf32>
    %3 = arith.divf %1, %2 : vector<32x128xf32>
    %4 = math.roundeven %3 : vector<32x128xf32>
    %cst = arith.constant -1.000000e+00 : f32
    %cst_2 = arith.constant 0.000000e+00 : f32
    %5 = vector.broadcast %cst : f32 to vector<32x128xf32>
    %6 = arith.maximumf %5, %4 : vector<32x128xf32>
    %7 = vector.broadcast %cst_2 : f32 to vector<32x128xf32>
    %8 = arith.minimumf %7, %6 : vector<32x128xf32>
    %9 = arith.truncf %8 : vector<32x128xf32> to vector<32x128xbf16>
    %c0_3 = arith.constant 0 : index
    %c0_4 = arith.constant 0 : index
    %10 = vector.load %arg2[%c0_3, %c0_4] : memref<32x128xbf16, #tpu.memory_space<vmem>>, vector<32x128xbf16>
    tpu.vector_store %arg2[%c0_3, %c0_4], %9 {strides = array<i32>} : memref<32x128xbf16, #tpu.memory_space<vmem>>, vector<32x128xbf16>,
    return
  }
}

</mosaic_0001>

<bundles_post_ra>
// kernel: tpu_custom_call.1
= control target key start
LH: loop header
LB: loop body
LE: loop exit
PB: predicated region body
PF: predicated region fallthrough
CT: control target
= control target key end

     0   :  { %8 = vsyncpa [#allocation4], 0  ;;  %s214_s0 = inlined_call_operand.<no memory space> [shape: f32[1], index: 0, kind: input, shape index: {}]   ;;  %s215_s1 = inlined_call_operand.hbm [shape: f32[32,128], index: 1, kind: input, shape index: {}]   ;;  %s216_s2 = inlined_call_operand.hbm [shape: bf16[32,128], index: 2, kind: output, shape index: {}]  }
   0x1   :  { %9 = vsyncpa [#allocation5], 0  ;;  %s166_s9 = smov [#allocation3]   ;;  %s118_s13 = scalar_lea.hbm %s215_s1, 512 }
   0x2   :  { %s17_s10 = sshll.u32 %s166_s9, 4  ;;  %p119_p0 = scmp.ne.s32.totalorder %s215_s1, %s118_s13  ;;  %s18_s10 = int_to_ptr.vmem [resolvable:$true] %s17_s10 }
   0x3   :  { %p122_p1 = scmp.lt.u32.totalorder %s118_s13, %s215_s1 }
   0x5   :  { %p124_p2 = pnand %p122_p1, %p119_p0 }
   0x7   :  { %127 = shalt.err (!%p124_p2)
}
   0x8   :  { %s128_s18 = scalar_lea.vmem %s18_s10, 512  ;;  %p133_p4 = scmp.lt.s32.totalorder %s18_s10, %s18_s10 }
   0x9   :  { %p129_p3 = scmp.ne.s32.totalorder %s18_s10, %s128_s18  ;;  %p134_p5 = scmp.lt.s32.totalorder %s128_s18, %s128_s18 }
   0xb   :  { %p135_p6 = por %p134_p5, %p133_p4 }
   0xd   :  { %p136_p7 = pnand %p135_p6, %p129_p3 }
   0xf   :  { %139 = shalt.err (!%p136_p7)
}
  0x10   :  { %s167_s19 = smov 128   ;;  %s168_s20 = smov 8  }
  0x11   :  { %23 = dma.hbm_to_vmem [thread:$0]  %s215_s1, 512, %s18_s10, [#allocation4], %s167_s19, %s167_s19, %s168_s20  }
  0x12   :  { %162 = dma.done.wait [#allocation4], 512  }
  0x13   :  { %163 = vsyncadd [#allocation4], 4294966784  ;;  %v32_v0 = vstv %s214_s0  ;;  %v28_v1 = vld [vmem:[#allocation3] sm:$0xff]  ;;  %v29_v2 = vld [vmem:[#allocation3 + $0x8] sm:$0xff]  ;;  %s169_s1 = smov [#allocation6]  }
  0x14   :  { %116 = vrcp.f32 %v32_v0  ;;  %v30_v3 = vld [vmem:[#allocation3 + $0x10] sm:$0xff]  ;;  %v31_v4 = vld [vmem:[#allocation3 + $0x18] sm:$0xff]  ;;  %s75_s0 = sshll.u32 %s169_s1, 4  ;;  %s76_s0 = int_to_ptr.vmem [resolvable:$true] %s75_s0 }
  0x15   :  { %s140_s25 = scalar_lea.vmem %s76_s0, 256  ;;  %p145_p9 = scmp.lt.s32.totalorder %s76_s0, %s76_s0 }
  0x16   :  { %p141_p8 = scmp.ne.s32.totalorder %s76_s0, %s140_s25  ;;  %p146_p10 = scmp.lt.s32.totalorder %s140_s25, %s140_s25 }
  0x18   :  { %p147_p11 = por %p146_p10, %p145_p9 }
  0x1a   :  { %p148_p12 = pnand %p147_p11, %p141_p8 }
  0x1e   :  { %v117_v5 = vpop.eup %116 }
  0x1f   :  { %v34_v6 = vmul.f32 %v117_v5, %v28_v1  ;;  %v35_v7 = vmul.f32 %v117_v5, %v29_v2  ;;  %v36_v8 = vmul.f32 %v117_v5, %v30_v3  ;;  %v37_v9 = vmul.f32 %v117_v5, %v31_v4 }
  0x21   :  { %v106_v10 = vround.rtne.f32 %v34_v6  ;;  %v107_v11 = vround.rtne.f32 %v35_v7  ;;  %v108_v12 = vround.rtne.f32 %v36_v8  ;;  %v109_v13 = vround.rtne.f32 %v37_v9 }
  0x23   :  { %v42_v14 = vmax.f32 %v106_v10, -1.0  ;;  %v43_v15 = vmax.f32 %v107_v11, -1.0  ;;  %v44_v16 = vmax.f32 %v108_v12, -1.0  ;;  %v45_v17 = vmax.f32 %v109_v13, -1.0 }
  0x25   :  { %v46_v18 = vmin.f32 %v42_v14, 0.0  ;;  %v47_v19 = vmin.f32 %v43_v15, 0.0  ;;  %v48_v20 = vmin.f32 %v44_v16, 0.0  ;;  %v49_v21 = vmin.f32 %v45_v17, 0.0 }
  0x27   :  { %v98_v22 = vpack.c.bf16 %v47_v19, %v46_v18  ;;  %v103_v23 = vpack.c.bf16 %v49_v21, %v48_v20 }
  0x29   :  { %99 = vst [vmem:[#allocation6] sm:$0xff] %v98_v22   ;;  %105 = vst [vmem:[#allocation6 + $0x8] sm:$0xff] %v103_v23  }
  0x2a   :  { %151 = shalt.err (!%p148_p12)
}
  0x2b   :  { %s152_s28 = scalar_lea.hbm %s216_s2, 256 }
  0x2c   :  { %p153_p13 = scmp.ne.s32.totalorder %s216_s2, %s152_s28  ;;  %p156_p0 = scmp.lt.u32.totalorder %s152_s28, %s216_s2 }
  0x2e   :  { %p158_p1 = pnand %p156_p0, %p153_p13 }
  0x30   :  { %161 = shalt.err (!%p158_p1)
}
  0x31   :  { %s170_s5 = smov 64   ;;  %s171_s6 = smov 4  }
  0x32   :  { %81 = dma.vmem_to_hbm [thread:$0]  %s76_s0, 256, %s216_s2, [#allocation5], %s170_s5, %s170_s5, %s171_s6  }
  0x33   :  { %164 = dma.done.wait [#allocation5], 256  }
  0x34   :  { %165 = vsyncadd [#allocation5], 4294967040 }
  0x35   :  { %85 = vsyncpa [#allocation4], 1 }
  0x36   :  { %86 = vsyncpa [#allocation5], 1 }

</bundles_post_ra>
